<compile_context>
chip_gen: v5e
topology: v5e:2x2
jax: 0.10.0
libtpu: 0.0.40
codegen_flags: <defaults>
</compile_context>

<pallas_src>
import functools
import math

import jax
import jax.numpy as jnp
from jax.experimental import pallas as pl
from jax.experimental.pallas import tpu as pltpu

_LANE = 128
_SUBLANE = 8
_VMEM_LIMIT = 32 * 1024 * 1024        # within physical VMEM on every generation
_TILE_BYTE_BUDGET = 8 * 1024 * 1024   # per (d-tile + out-tile) pair; x2 double-buffered


def _round_up(x, m):
    return ((x + m - 1) // m) * m


# ---------------------------------------------------------------------------
# Kernels
# ---------------------------------------------------------------------------
def _td_matmul_kernel(d_ref, wt_ref, b_ref, o_ref, *, orig_out):
    # d_ref: (TB, In)  wt_ref: (In, OutPad)  b_ref: (1, OutPad)  o_ref: (TB, orig_out)
    lin = jnp.dot(d_ref[...], wt_ref[...], preferred_element_type=jnp.float32)
    lin = lin + b_ref[...].astype(jnp.float32)
    gamma = jnp.exp(-jnp.maximum(lin, 0.0))
    # Store only the real output columns; padded lanes never hit HBM.
    o_ref[...] = gamma[:, :orig_out].astype(o_ref.dtype)


def _td_diag_kernel(d_ref, wdiag_ref, b_ref, o_ref):
    # Pure VPU/EUP elementwise path: d * diag(W) + b, relu, exp.
    # d_ref: (TB, Wd)  wdiag_ref/b_ref: (1, Wd)  o_ref: (TB, Wd)
    lin = (
        d_ref[...].astype(jnp.float32) * wdiag_ref[...].astype(jnp.float32)
        + b_ref[...].astype(jnp.float32)
    )
    gamma = jnp.exp(-jnp.maximum(lin, 0.0))
    o_ref[...] = gamma.astype(o_ref.dtype)


# ---------------------------------------------------------------------------
# Tiling helper
# ---------------------------------------------------------------------------
def _pick_batch_tile(num_rows, row_bytes, batch_tile):
    """Pick a sublane-aligned row tile: big enough to amortize per-step
    overhead, small enough that double-buffered tiles stay within VMEM,
    and split into >=2 steps when possible so v7x can use both TCs."""
    cap = max(_SUBLANE, _TILE_BYTE_BUDGET // max(row_bytes, 1))
    tb = min(batch_tile, cap)
    tb = max(_SUBLANE, (tb // _SUBLANE) * _SUBLANE)
    if num_rows <= tb:
        if num_rows >= 2 * _SUBLANE:
            # Single-tile batch: split in two so the "parallel" grid axis can
            # shard across both TensorCores on v7x (no-op on v5e/v6e).
            tb = _round_up(pl.cdiv(num_rows, 2), _SUBLANE)
        else:
            tb = num_rows
    return tb


# ---------------------------------------------------------------------------
# One-time parameter preparation (hoist out of per-timestep loops)
# ---------------------------------------------------------------------------
def prepare_temporal_decay_params(W, b, *, diag=False, compute_dtype=None):
    out_sz, in_sz = W.shape
    if diag:
        assert in_sz == out_sz, "diag=True requires input_size == output_size"
        w_diag = jnp.diagonal(W).reshape(1, out_sz).astype(jnp.float32)
        b2d = b.reshape(1, out_sz).astype(jnp.float32)
        return {
            "diag": True, "in_sz": in_sz, "out_sz": out_sz,
            "w_diag": w_diag, "b": b2d,
        }

    wt = W.T                                      # (In, Out) — feeds MXU directly
    out_pad = _round_up(out_sz, _LANE)            # lane-dense MXU N dim
    bb = b
    if out_pad != out_sz:
        wt = jnp.pad(wt, ((0, 0), (0, out_pad - out_sz)))
        bb = jnp.pad(bb, ((0, out_pad - out_sz),))
    if compute_dtype is not None:
        wt = wt.astype(compute_dtype)
    return {
        "diag": False, "in_sz": in_sz, "out_sz": out_sz, "out_pad": out_pad,
        "wt": wt, "b": bb.reshape(1, out_pad).astype(jnp.float32),
        "compute_dtype": compute_dtype,
    }


# ---------------------------------------------------------------------------
# Apply (per call / per timestep)
# ---------------------------------------------------------------------------
def temporal_decay_prepared(d, params, *, batch_tile=8192):
    batch, in_sz = d.shape
    assert in_sz == params["in_sz"]
    out_sz = params["out_sz"]

    compiler_params = pltpu.CompilerParams(
        dimension_semantics=("parallel",),   # megacore sharding on v7x
        vmem_limit_bytes=_VMEM_LIMIT,
    )

    if params["diag"]:
        w_diag, b2d = params["w_diag"], params["b"]
        # Lane-pack the elementwise work into full 128-wide vregs when the
        # feature size divides 128 and the batch reshapes cleanly.
        pack = 1
        if in_sz <= _LANE and _LANE % in_sz == 0 and batch % (_LANE // in_sz) == 0:
            pack = _LANE // in_sz
        if pack > 1:
            rows, width = batch // pack, in_sz * pack     # width == 128
            d_k = d.reshape(rows, width)                  # contiguous reshape
            w_k = jnp.tile(w_diag, (1, pack))
            b_k = jnp.tile(b2d, (1, pack))
        else:
            rows, width = batch, in_sz
            d_k, w_k, b_k = d, w_diag, b2d

        row_bytes = 2 * width * 4
        tb = _pick_batch_tile(rows, row_bytes, batch_tile)
        grid = (pl.cdiv(rows, tb),)

        out = pl.pallas_call(
            _td_diag_kernel,
            out_shape=jax.ShapeDtypeStruct((rows, width), d.dtype),
            grid=grid,
            in_specs=[
                pl.BlockSpec((tb, width), lambda i: (i, 0)),
                pl.BlockSpec((1, width), lambda i: (0, 0)),   # resident
                pl.BlockSpec((1, width), lambda i: (0, 0)),   # resident
            ],
            out_specs=pl.BlockSpec((tb, width), lambda i: (i, 0)),
            compiler_params=compiler_params,
        )(d_k, w_k, b_k)
        if pack > 1:
            out = out.reshape(batch, out_sz)
        return out

    # --- non-diag (matmul) path ---
    out_pad = params["out_pad"]
    wt, b2d = params["wt"], params["b"]
    cd = params.get("compute_dtype")
    d_k = d.astype(cd) if cd is not None else d

    row_bytes = (in_sz * jnp.dtype(d_k.dtype).itemsize
                 + out_sz * jnp.dtype(d.dtype).itemsize)
    tb = _pick_batch_tile(batch, row_bytes, batch_tile)
    grid = (pl.cdiv(batch, tb),)

    kernel = functools.partial(_td_matmul_kernel, orig_out=out_sz)
    return pl.pallas_call(
        kernel,
        out_shape=jax.ShapeDtypeStruct((batch, out_sz), d.dtype),
        grid=grid,
        in_specs=[
            pl.BlockSpec((tb, in_sz), lambda i: (i, 0)),
            pl.BlockSpec((in_sz, out_pad), lambda i: (0, 0)),   # resident weights
            pl.BlockSpec((1, out_pad), lambda i: (0, 0)),       # resident bias
        ],
        out_specs=pl.BlockSpec((tb, out_sz), lambda i: (i, 0)),
        compiler_params=compiler_params,
    )(d_k, wt, b2d)


def temporal_decay(d, W, b, *, diag=False, batch_tile=8192, compute_dtype=None):
    """gamma = exp(-relu(linear(d, W (optionally * I), b))) via Pallas."""
    params = prepare_temporal_decay_params(W, b, diag=diag,
                                           compute_dtype=compute_dtype)
    return temporal_decay_prepared(d, params, batch_tile=batch_tile)


# ---------------------------------------------------------------------------
# Reference + test
# ---------------------------------------------------------------------------
def _reference(d, W, b, *, diag: bool):
    w = W
    if diag:
        w = W * jnp.eye(W.shape[0], dtype=W.dtype)
    lin = d @ w.T + b[None, :]
    return jnp.exp(-jnp.maximum(lin, 0.0))


def _make_params(key, out_sz, in_sz):
    # Mirrors reset_parameters(): uniform(-stdv, stdv), stdv = 1/sqrt(out_sz)
    stdv = 1.0 / math.sqrt(out_sz)
    k_w, k_b = jax.random.split(key)
    W = jax.random.uniform(k_w, (out_sz, in_sz), jnp.float32, -stdv, stdv)
    b = jax.random.uniform(k_b, (out_sz,), jnp.float32, -stdv, stdv)
    return W, b


if __name__ == "__main__":
    key = jax.random.PRNGKey(0)
    ok = True

    # Case 1: BRIOS-like shapes, diag both ways (single-tile path).
    k0, k1, key = jax.random.split(key, 3)
    W, b = _make_params(k0, 32, 32)
    d = jax.random.uniform(k1, (8, 32), jnp.float32, 0.0, 5.0)
    for diag in (False, True):
        out = jax.block_until_ready(temporal_decay(d, W, b, diag=diag))
        ref = _reference(d, W, b, diag=diag)
        if not jnp.allclose(out, ref, atol=1e-5, rtol=1e-5):
            ok = False
            print(f"MISMATCH case1 diag={diag}: "
                  f"max err {float(jnp.max(jnp.abs(out - ref)))}")

    # Case 2: non-square, multi-step grid (exercises tiling + ragged last tile
    # + unpadded output store), diag=False.
    k0, k1, key = jax.random.split(key, 3)
    W2, b2 = _make_params(k0, 24, 16)
    d2 = jax.random.uniform(k1, (40, 16), jnp.float32, 0.0, 5.0)
    out = jax.block_until_ready(temporal_decay(d2, W2, b2, diag=False))
    ref = _reference(d2, W2, b2, diag=False)
    if not jnp.allclose(out, ref, atol=1e-5, rtol=1e-5):
        ok = False
        print(f"MISMATCH case2: max err {float(jnp.max(jnp.abs(out - ref)))}")

    # Case 3: diag lane-packed path with a different feature size.
    k0, k1, key = jax.random.split(key, 3)
    W3, b3 = _make_params(k0, 16, 16)
    d3 = jax.random.uniform(k1, (40, 16), jnp.float32, 0.0, 5.0)
    out = jax.block_until_ready(temporal_decay(d3, W3, b3, diag=True))
    ref = _reference(d3, W3, b3, diag=True)
    if not jnp.allclose(out, ref, atol=1e-5, rtol=1e-5):
        ok = False
        print(f"MISMATCH case3: max err {float(jnp.max(jnp.abs(out - ref)))}")

    if ok:
        print("KERNEL_OK")
</pallas_src>

<mosaic_0001>
module attributes {stable_mosaic.version = 11 : i64} {
  func.func @_td_matmul_kernel(%arg0: i32, %arg1: memref<8x32xf32, #tpu.memory_space<vmem>>, %arg2: memref<32x128xf32, #tpu.memory_space<vmem>>, %arg3: memref<1x128xf32, #tpu.memory_space<vmem>>, %arg4: memref<8x32xf32, #tpu.memory_space<vmem>>) attributes {dimension_semantics = [#tpu.dimension_semantics<parallel>], iteration_bounds = array<i64: 1>, scalar_prefetch = 0 : i64, scratch_operands = 0 : i64, tpu.core_type = #tpu.core_type<tc>, window_params = [{transform_indices = @transform_0, window_bounds = array<i64: 8, 32>}, {pipeline_mode = #tpu.pipeline_mode<synchronous>, transform_indices = @transform_1, window_bounds = array<i64: 32, 128>}, {pipeline_mode = #tpu.pipeline_mode<synchronous>, transform_indices = @transform_2, window_bounds = array<i64: 1, 128>}, {transform_indices = @transform_3, window_bounds = array<i64: 8, 32>}]} {
    %c0 = arith.constant 0 : index
    %c0_0 = arith.constant 0 : index
    %0 = vector.load %arg1[%c0, %c0_0] : memref<8x32xf32, #tpu.memory_space<vmem>>, vector<8x32xf32>
    %c0_1 = arith.constant 0 : index
    %c0_2 = arith.constant 0 : index
    %1 = vector.load %arg2[%c0_1, %c0_2] : memref<32x128xf32, #tpu.memory_space<vmem>>, vector<32x128xf32>
    %cst = arith.constant dense<0.000000e+00> : vector<8x128xf32>
    %2 = tpu.matmul %0, %1, %cst {dimension_numbers = #tpu.dot_dimension_numbers<[1], [0], [0], [1], [0, 0, 1, 1], [], []>} : vector<8x32xf32>, vector<32x128xf32>, vector<8x128xf32> -> vector<8x128xf32>
    %c0_3 = arith.constant 0 : index
    %c0_4 = arith.constant 0 : index
    %3 = vector.load %arg3[%c0_3, %c0_4] : memref<1x128xf32, #tpu.memory_space<vmem>>, vector<1x128xf32>
    %4 = vector.broadcast %3 : vector<1x128xf32> to vector<8x128xf32>
    %5 = arith.addf %2, %4 : vector<8x128xf32>
    %cst_5 = arith.constant 0.000000e+00 : f32
    %6 = vector.broadcast %cst_5 : f32 to vector<8x128xf32>
    %7 = arith.maximumf %5, %6 : vector<8x128xf32>
    %cst_6 = arith.constant 0.000000e+00 : f32
    %8 = vector.broadcast %cst_6 : f32 to vector<8x128xf32>
    %9 = arith.subf %8, %7 : vector<8x128xf32>
    %10 = math.exp %9 : vector<8x128xf32>
    %11 = vector.extract_strided_slice %10 {offsets = [0, 0], sizes = [8, 32], strides = [1, 1]} : vector<8x128xf32> to vector<8x32xf32>
    %c0_7 = arith.constant 0 : index
    %c0_8 = arith.constant 0 : index
    %12 = vector.load %arg4[%c0_7, %c0_8] : memref<8x32xf32, #tpu.memory_space<vmem>>, vector<8x32xf32>
    tpu.vector_store %arg4[%c0_7, %c0_8], %11 {strides = array<i32>} : memref<8x32xf32, #tpu.memory_space<vmem>>, vector<8x32xf32>,
    return
  }
  func.func @transform_0(%arg0: i32) -> (i32, i32) {
    %c0_i32 = arith.constant 0 : i32
    %c0_i32_0 = arith.constant 0 : i32
    return %arg0, %c0_i32 : i32, i32
  }
  func.func @transform_1(%arg0: i32) -> (i32, i32) {
    %c0_i32 = arith.constant 0 : i32
    %c0_i32_0 = arith.constant 0 : i32
    %c0_i32_1 = arith.constant 0 : i32
    return %c0_i32, %c0_i32_0 : i32, i32
  }
  func.func @transform_2(%arg0: i32) -> (i32, i32) {
    %c0_i32 = arith.constant 0 : i32
    %c0_i32_0 = arith.constant 0 : i32
    %c0_i32_1 = arith.constant 0 : i32
    return %c0_i32, %c0_i32_0 : i32, i32
  }
  func.func @transform_3(%arg0: i32) -> (i32, i32) {
    %c0_i32 = arith.constant 0 : i32
    %c0_i32_0 = arith.constant 0 : i32
    return %arg0, %c0_i32 : i32, i32
  }
}

</mosaic_0001>

<bundles_post_ra>
// kernel: tpu_custom_call.1
= control target key start
LH: loop header
LB: loop body
LE: loop exit
PB: predicated region body
PF: predicated region fallthrough
CT: control target
= control target key end

     0   :  { %8 = vsyncpa [#allocation3], 0  ;;  %s227_s0 = inlined_call_operand.hbm [shape: f32[8,32], index: 0, kind: input, shape index: {}]   ;;  %s228_s1 = inlined_call_operand.hbm [shape: f32[32,128], index: 1, kind: input, shape index: {}]   ;;  %s229_s2 = inlined_call_operand.vmem [shape: f32[1,128], index: 2, kind: input, shape index: {}]   ;;  %s230_s3 = inlined_call_operand.hbm [shape: f32[8,32], index: 3, kind: output, shape index: {}]  }
   0x1   :  { %9 = vsyncpa [#allocation6], 0 }
   0x2   :  { %10 = vsyncpa [#allocation4], 0  ;;  %s16_s14 = sshll.u32 %s227_s0, 4  ;;  %s188_s15 = smov [#allocation2]   ;;  %s17_s14 = int_to_ptr.hbm [resolvable:$true] %s16_s14 }
   0x3   :  { %s18_s16 = sshll.u32 %s188_s15, 4  ;;  %s26_s19 = sshll.u32 %s228_s1, 4  ;;  %s19_s16 = int_to_ptr.vmem [resolvable:$true] %s18_s16  ;;  %s27_s19 = int_to_ptr.hbm [resolvable:$true] %s26_s19 }
   0x4   :  { %21 = dma.hbm_to_vmem [thread:$0]  %s17_s14, 128, %s19_s16, [#allocation3]  }
   0x5   :  { %s189_s20 = smov [#allocation5]   ;;  %s190_s22 = smov 128  }
   0x6   :  { %s28_s21 = sshll.u32 %s189_s20, 4  ;;  %s191_s23 = smov 8   ;;  %s29_s21 = int_to_ptr.vmem [resolvable:$true] %s28_s21 }
   0x7   :  { %34 = dma.hbm_to_vmem [thread:$0]  %s27_s19, 512, %s29_s21, [#allocation6], %s190_s22, %s190_s22, %s191_s23  }
   0x8   :  { %182 = dma.done.wait [#allocation3], 128  }
   0x9   :  { %183 = vsyncadd [#allocation3], 4294967168 }
   0xa   :  { %184 = dma.done.wait [#allocation6], 512  }
   0xb   :  { %185 = vsyncadd [#allocation6], 4294966784  ;;  %v49_v0 = vld [vmem:[#allocation5 + $0x18] sm:$0xff]  ;;  %v48_v1 = vld [vmem:[#allocation5 + $0x10] sm:$0xff]  ;;  %vm54_vm0 = vcmask 261120   ;;  %s192_s24 = smov [#allocation7]  }
   0xc   :  { %70 = vmatpush.msra.mxu0 %v49_v0  ;;  %v47_v2 = vld [vmem:[#allocation5 + $0x8] sm:$0xff]  ;;  %v46_v3 = vld [vmem:[#allocation5] sm:$0xff]  ;;  %v45_v4 = vld [vmem:[#allocation2] sm:$0xff]  ;;  %s88_s25 = sshll.u32 %s192_s24, 4  ;;  %s90_s28 = sshll.u32 %s230_s3, 4  ;;  %s89_s25 = int_to_ptr.vmem [resolvable:$true] %s88_s25  ;;  %s91_s28 = int_to_ptr.hbm [resolvable:$true] %s90_s28 }
   0xd   :  { %v107_v5 = vld [vmem:[%s229_s2] ss:$0 sm:$0xff] }
   0xe   :  { %71 = vmatpush.msra.mxu0 %v48_v1 }
  0x10   :  { %72 = vmatpush.msra.mxu0 %v47_v2 }
  0x12   :  { %73 = vmatpush.msra.mxu0 %v46_v3 }
  0x13   :  { %101 = vmatmul.msk.f32.vlgmr.msra.gmra.mxu0 %vm54_vm0, %v45_v4 }
  0x90   :  { %v75_v6 = vpop.f32.mrf.mxu0 }
  0x91   :  { %v76_v7 = vadd.f32 %v107_v5, %v75_v6 }
  0x93   :  { %v78_v8 = vmax.f32 %v76_v7, 0.0 }
  0x95   :  { %v79_v9 = vsub.f32 0.0, %v78_v8 }
  0x97   :  { %v80_v10 = vmul.f32 1.442695, %v79_v9 }
  0x99   :  { %108 = vpow2.f32 %v80_v10 }
  0x9f   :  { %v109_v11 = vpop.eup %108 }
  0xa0   :  { %82 = vst.msk [vmem:[#allocation7] sm:$0xff] %vm54_vm0, %v109_v11 }
  0xa1   :  { %93 = dma.vmem_to_hbm [thread:$0]  %s89_s25, 128, %s91_s28, [#allocation4]  }
  0xa2   :  { %186 = dma.done.wait [#allocation4], 128  }
  0xa3   :  { %187 = vsyncadd [#allocation4], 4294967168 }
  0xa4   :  { %98 = vsyncpa [#allocation3], 1 }
  0xa5   :  { %99 = vsyncpa [#allocation6], 1 }
  0xa6   :  { %100 = vsyncpa [#allocation4], 1 }

</bundles_post_ra>
